<compile_context>
chip_gen: v7x
topology: tpu7x:2x2x1
jax: 0.10.0
libtpu: 0.0.40
codegen_flags: <defaults>
</compile_context>

<pallas_src>
import jax
import jax.numpy as jnp
from jax import lax
from jax.experimental import pallas as pl
from jax.experimental.pallas import tpu as pltpu

IN_F, HID_F, OUT_F = 13, 14, 5

# Parameter-slab layout (all row starts are multiples of 8):
#   rows  0:14, cols 0:13 -> fc1.weight  (14, 13)   (PyTorch (out,in) layout)
#   rows 16:30, col  0    -> fc1.bias    (14,)  as a column
#   rows 32:37, cols 0:14 -> fc2.weight  (5, 14)
#   rows 40:45, col  0    -> fc2.bias    (5,)   as a column
SLAB_SHAPE = (48, 128)


def pack_params(fc1_w, fc1_b, fc2_w, fc2_b):
    """Pack all parameters (PyTorch layout) into one TPU-tile-friendly slab."""
    slab = jnp.zeros(SLAB_SHAPE, jnp.float32)
    slab = slab.at[0:HID_F, 0:IN_F].set(fc1_w.astype(jnp.float32))
    slab = slab.at[16:16 + HID_F, 0].set(fc1_b.reshape(-1).astype(jnp.float32))
    slab = slab.at[32:32 + OUT_F, 0:HID_F].set(fc2_w.astype(jnp.float32))
    slab = slab.at[40:40 + OUT_F, 0].set(fc2_b.reshape(-1).astype(jnp.float32))
    return slab


def boston_kernel(p_ref, x_ref, ot_ref):
    # Static slices of the resident parameter slab.
    w1 = p_ref[0:HID_F, 0:IN_F]              # (14, 13)
    b1 = p_ref[16:16 + HID_F, 0:1]           # (14, 1)
    w2 = p_ref[32:32 + OUT_F, 0:HID_F]       # (5, 14)
    b2 = p_ref[40:40 + OUT_F, 0:1]           # (5, 1)

    x = x_ref[...]                           # (TN, 13), batch on sublanes

    # fc1 + ReLU computed transposed: h^T = W1 . x^T -> (14, TN).
    # Expressed as a transposed-RHS matmul (the q @ k^T pattern), which the
    # MXU handles natively -- no explicit transpose of the big x block.
    ht = lax.dot_general(w1, x, (((1,), (1,)), ((), ())),
                         preferred_element_type=jnp.float32) + b1
    ht = jnp.maximum(ht, 0.0)

    # fc2: z^T = W2 . h^T -> (5, TN), classes on sublanes, batch on lanes.
    zt = jnp.dot(w2, ht, preferred_element_type=jnp.float32) + b2

    # log_softmax over the class axis (axis 0 here == torch dim=1).
    # NOTE: for the ragged last grid block the padded batch columns hold
    # unspecified data; columns are independent and out-of-range columns are
    # never written back, so this is benign -- do not "fix" it.
    m = jnp.max(zt, axis=0, keepdims=True)
    s = zt - m
    lse = jnp.log(jnp.sum(jnp.exp(s), axis=0, keepdims=True))
    ot_ref[...] = (s - lse).astype(ot_ref.dtype)


def _choose_tile(n, tile_n):
    """Pick a legal, 128-aligned batch tile with >= 2 grid steps when useful."""
    if n <= 256:
        return n                      # single full block; block dims == array dims
    tn = min(int(tile_n), n)
    tn = max(128, (tn // 128) * 128)  # lane dim of (5,TN) out block / sublane dim of x block
    if tn >= n:                       # keep >= 2 steps so v7x can use both TCs
        tn = max(128, ((-(-n // 2) + 127) // 128) * 128)
    if tn >= n:                       # safety fallback
        tn = n
    return tn


def boston_forward_t(x, params, *, tile_n=8192):
    """Fused forward pass; returns the lane-dense transposed output (5, N)."""
    n, in_f = x.shape
    tn = _choose_tile(n, tile_n)
    grid = (pl.cdiv(n, tn),)
    return pl.pallas_call(
        boston_kernel,
        out_shape=jax.ShapeDtypeStruct((OUT_F, n), jnp.float32),
        grid=grid,
        in_specs=[
            # One resident parameter slab (single DMA, reused every grid step).
            pl.BlockSpec(SLAB_SHAPE, lambda i: (0, 0)),
            # Batch-tiled activations, natural (N, 13) layout.
            # TODO(synk): accept a producer-side x^T (13, N) / bf16 x to make
            # the input DMA lane-dense and halve the dominant HBM read.
            pl.BlockSpec((tn, in_f), lambda i: (i, 0)),
        ],
        # Lane-dense output block: last dim = tn (multiple of 128 when tiled).
        out_specs=pl.BlockSpec((OUT_F, tn), lambda i: (0, i)),
        compiler_params=pltpu.CompilerParams(
            # Batch tiles are independent -> shard across TCs on v7x megacore.
            dimension_semantics=("parallel",),
            # Padded working set ~= 2*(512+32)*TN B + ~200*TN B of temps
            # (~11 MiB at TN=8192); raise the scoped default well above that
            # while staying under v7x's 64 MiB physical VMEM per TC.
            vmem_limit_bytes=48 * 1024 * 1024,
        ),
    )(params, x)


def boston_forward(x, params, *, tile_n=8192):
    """Module-semantics forward: (N, 13) -> log_softmax logits (N, 5)."""
    return boston_forward_t(x, params, tile_n=tile_n).T


def reference_forward(x, fc1_w, fc1_b, fc2_w, fc2_b):
    h = jnp.maximum(x @ fc1_w.T + fc1_b, 0.0)
    z = h @ fc2_w.T + fc2_b
    return jax.nn.log_softmax(z, axis=1)


if __name__ == "__main__":
    key = jax.random.PRNGKey(0)
    k_x, k_w1, k_b1, k_w2, k_b2, k_x2 = jax.random.split(key, 6)

    # Deterministic synthetic parameters (PyTorch-style uniform fan-in init),
    # stored in PyTorch (out_features, in_features) orientation.
    bound1 = 1.0 / (IN_F ** 0.5)
    bound2 = 1.0 / (HID_F ** 0.5)
    fc1_w = jax.random.uniform(k_w1, (HID_F, IN_F), jnp.float32, -bound1, bound1)
    fc1_b = jax.random.uniform(k_b1, (HID_F,), jnp.float32, -bound1, bound1)
    fc2_w = jax.random.uniform(k_w2, (OUT_F, HID_F), jnp.float32, -bound2, bound2)
    fc2_b = jax.random.uniform(k_b2, (OUT_F,), jnp.float32, -bound2, bound2)
    params = pack_params(fc1_w, fc1_b, fc2_w, fc2_b)

    # Small batch (single grid step, block dims == array dims).
    batch = 8
    x = jax.random.normal(k_x, (batch, IN_F), dtype=jnp.float32)
    out = jax.block_until_ready(boston_forward(x, params))
    ref = reference_forward(x, fc1_w, fc1_b, fc2_w, fc2_b)
    assert out.shape == (batch, OUT_F)
    assert jnp.allclose(out, ref, atol=1e-5, rtol=1e-5)

    # Tiled case: explicit small tile -> multi-step grid with ragged last block.
    batch2 = 1030
    x2 = jax.random.normal(k_x2, (batch2, IN_F), dtype=jnp.float32)
    out2 = jax.block_until_ready(boston_forward(x2, params, tile_n=256))
    ref2 = reference_forward(x2, fc1_w, fc1_b, fc2_w, fc2_b)
    assert out2.shape == (batch2, OUT_F)
    assert jnp.allclose(out2, ref2, atol=1e-5, rtol=1e-5)

    # Default tile path: auto-rounds to 128 and keeps >= 2 grid steps (1024+6).
    out3 = jax.block_until_ready(boston_forward(x2, params))
    assert jnp.allclose(out3, ref2, atol=1e-5, rtol=1e-5)

    print("KERNEL_OK")
</pallas_src>

<mosaic_0001>
module attributes {stable_mosaic.version = 11 : i64} {
  func.func @boston_kernel(%arg0: i32, %arg1: memref<48x128xf32, #tpu.memory_space<vmem>>, %arg2: memref<8x13xf32, #tpu.memory_space<vmem>>, %arg3: memref<5x8xf32, #tpu.memory_space<vmem>>) attributes {dimension_semantics = [#tpu.dimension_semantics<parallel>], iteration_bounds = array<i64: 1>, scalar_prefetch = 0 : i64, scratch_operands = 0 : i64, tpu.core_type = #tpu.core_type<tc>, window_params = [{pipeline_mode = #tpu.pipeline_mode<synchronous>, transform_indices = @transform_0, window_bounds = array<i64: 48, 128>}, {transform_indices = @transform_1, window_bounds = array<i64: 8, 13>}, {transform_indices = @transform_2, window_bounds = array<i64: 5, 8>}]} {
    %c0 = arith.constant 0 : index
    %c0_0 = arith.constant 0 : index
    %0 = vector.load %arg1[%c0, %c0_0] : memref<48x128xf32, #tpu.memory_space<vmem>>, vector<14x13xf32>
    %c16 = arith.constant 16 : index
    %c0_1 = arith.constant 0 : index
    %1 = vector.load %arg1[%c16, %c0_1] : memref<48x128xf32, #tpu.memory_space<vmem>>, vector<14x1xf32>
    %c32 = arith.constant 32 : index
    %c0_2 = arith.constant 0 : index
    %2 = vector.load %arg1[%c32, %c0_2] : memref<48x128xf32, #tpu.memory_space<vmem>>, vector<5x14xf32>
    %c40 = arith.constant 40 : index
    %c0_3 = arith.constant 0 : index
    %3 = vector.load %arg1[%c40, %c0_3] : memref<48x128xf32, #tpu.memory_space<vmem>>, vector<5x1xf32>
    %c0_4 = arith.constant 0 : index
    %c0_5 = arith.constant 0 : index
    %4 = vector.load %arg2[%c0_4, %c0_5] : memref<8x13xf32, #tpu.memory_space<vmem>>, vector<8x13xf32>
    %cst = arith.constant dense<0.000000e+00> : vector<14x8xf32>
    %5 = tpu.matmul %0, %4, %cst {dimension_numbers = #tpu.dot_dimension_numbers<[1], [1], [0], [0], [0, 0, 1, 0], [], []>} : vector<14x13xf32>, vector<8x13xf32>, vector<14x8xf32> -> vector<14x8xf32>
    %6 = vector.broadcast %1 : vector<14x1xf32> to vector<14x8xf32>
    %7 = arith.addf %5, %6 : vector<14x8xf32>
    %cst_6 = arith.constant 0.000000e+00 : f32
    %8 = vector.broadcast %cst_6 : f32 to vector<14x8xf32>
    %9 = arith.maximumf %7, %8 : vector<14x8xf32>
    %cst_7 = arith.constant dense<0.000000e+00> : vector<5x8xf32>
    %10 = tpu.matmul %2, %9, %cst_7 {dimension_numbers = #tpu.dot_dimension_numbers<[1], [0], [0], [1], [0, 0, 1, 1], [], []>} : vector<5x14xf32>, vector<14x8xf32>, vector<5x8xf32> -> vector<5x8xf32>
    %11 = vector.broadcast %3 : vector<5x1xf32> to vector<5x8xf32>
    %12 = arith.addf %10, %11 : vector<5x8xf32>
    %cst_8 = arith.constant dense<0xFF800000> : vector<8xf32>
    %13 = vector.multi_reduction <maximumf>, %12, %cst_8 [0] : vector<5x8xf32> to vector<8xf32>
    %14 = vector.shape_cast %13 : vector<8xf32> to vector<1x8xf32>
    %15 = vector.broadcast %14 : vector<1x8xf32> to vector<5x8xf32>
    %16 = arith.subf %12, %15 : vector<5x8xf32>
    %17 = math.exp %16 : vector<5x8xf32>
    %cst_9 = arith.constant dense<0.000000e+00> : vector<8xf32>
    %18 = vector.multi_reduction <add>, %17, %cst_9 [0] : vector<5x8xf32> to vector<8xf32>
    %19 = vector.shape_cast %18 : vector<8xf32> to vector<1x8xf32>
    %20 = math.log %19 : vector<1x8xf32>
    %21 = vector.broadcast %20 : vector<1x8xf32> to vector<5x8xf32>
    %22 = arith.subf %16, %21 : vector<5x8xf32>
    %c0_10 = arith.constant 0 : index
    %c0_11 = arith.constant 0 : index
    %23 = vector.load %arg3[%c0_10, %c0_11] : memref<5x8xf32, #tpu.memory_space<vmem>>, vector<5x8xf32>
    tpu.vector_store %arg3[%c0_10, %c0_11], %22 {strides = array<i32>} : memref<5x8xf32, #tpu.memory_space<vmem>>, vector<5x8xf32>,
    return
  }
  func.func @transform_0(%arg0: i32) -> (i32, i32) {
    %c0_i32 = arith.constant 0 : i32
    %c0_i32_0 = arith.constant 0 : i32
    %c0_i32_1 = arith.constant 0 : i32
    return %c0_i32, %c0_i32_0 : i32, i32
  }
  func.func @transform_1(%arg0: i32) -> (i32, i32) {
    %c0_i32 = arith.constant 0 : i32
    %c0_i32_0 = arith.constant 0 : i32
    return %arg0, %c0_i32 : i32, i32
  }
  func.func @transform_2(%arg0: i32) -> (i32, i32) {
    %c0_i32 = arith.constant 0 : i32
    %c0_i32_0 = arith.constant 0 : i32
    return %c0_i32, %arg0 : i32, i32
  }
}

</mosaic_0001>

<bundles_post_ra>
// kernel: tpu_custom_call.1
= control target key start
LH: loop header
LB: loop body
LE: loop exit
PB: predicated region body
PF: predicated region fallthrough
CT: control target
= control target key end

     0   :  { %7 = vsyncpa [#allocation3], 0  ;;  %s442_s0 = inlined_call_operand.hbm [shape: f32[48,128], index: 0, kind: input, shape index: {}]   ;;  %s443_s1 = inlined_call_operand.hbm [shape: f32[8,13], index: 1, kind: input, shape index: {}]   ;;  %s444_s2 = inlined_call_operand.hbm [shape: f32[5,8], index: 2, kind: output, shape index: {}]  }
   0x1   :  { %8 = vsyncpa [#allocation6], 0 }
   0x2   :  { %9 = vsyncpa [#allocation4], 0  ;;  %s378_s9 = smov [#allocation2]   ;;  %s306_s13 = scalar_lea.hbm %s442_s0, 768 }
   0x3   :  { %s15_s10 = sshll.u32 %s378_s9, 4  ;;  %p307_p0 = scmp.ne.s32.totalorder %s442_s0, %s306_s13  ;;  %s16_s10 = int_to_ptr.vmem [resolvable:$true] %s15_s10 }
   0x4   :  { %p310_p1 = scmp.lt.u32.totalorder %s306_s13, %s442_s0 }
   0x6   :  { %p312_p2 = pnand %p310_p1, %p307_p0 }
   0x8   :  { %315 = shalt.err (!%p312_p2)
}
   0x9   :  { %s316_s18 = scalar_lea.vmem %s16_s10, 768  ;;  %p321_p4 = scmp.lt.s32.totalorder %s16_s10, %s16_s10 }
   0xa   :  { %p317_p3 = scmp.ne.s32.totalorder %s16_s10, %s316_s18  ;;  %p322_p5 = scmp.lt.s32.totalorder %s316_s18, %s316_s18 }
   0xc   :  { %p323_p6 = por %p322_p5, %p321_p4 }
   0xe   :  { %p324_p7 = pnand %p323_p6, %p317_p3 }
  0x10   :  { %327 = shalt.err (!%p324_p7)
}
  0x11   :  { %s379_s19 = smov 128   ;;  %s380_s20 = smov 8  }
  0x12   :  { %21 = dma.hbm_to_vmem [thread:$0]  %s442_s0, 768, %s16_s10, [#allocation3], %s379_s19, %s379_s19, %s380_s20  }
  0x13   :  { %s381_s23 = smov [#allocation5]   ;;  %s328_s27 = scalar_lea.hbm %s443_s1, 128 }
  0x14   :  { %s28_s24 = sshll.u32 %s381_s23, 4  ;;  %p329_p8 = scmp.ne.s32.totalorder %s443_s1, %s328_s27  ;;  %s29_s24 = int_to_ptr.vmem [resolvable:$true] %s28_s24 }
  0x15   :  { %p332_p9 = scmp.lt.u32.totalorder %s328_s27, %s443_s1 }
  0x17   :  { %p334_p10 = pnand %p332_p9, %p329_p8 }
  0x19   :  { %337 = shalt.err (!%p334_p10)
}
  0x1a   :  { %s338_s4 = scalar_lea.vmem %s29_s24, 128  ;;  %p343_p12 = scmp.lt.s32.totalorder %s29_s24, %s29_s24 }
  0x1b   :  { %p339_p11 = scmp.ne.s32.totalorder %s29_s24, %s338_s4  ;;  %p344_p13 = scmp.lt.s32.totalorder %s338_s4, %s338_s4 }
  0x1d   :  { %p345_p0 = por %p344_p13, %p343_p12 }
  0x1f   :  { %p346_p1 = pnand %p345_p0, %p339_p11 }
  0x21   :  { %349 = shalt.err (!%p346_p1)
}
  0x22   :  { %31 = dma.hbm_to_vmem [thread:$0]  %s443_s1, 128, %s29_s24, [#allocation6]  }
  0x23   :  { %372 = dma.done.wait [#allocation3], 768  }
  0x24   :  { %373 = vsyncadd [#allocation3], 4294966528 }
  0x25   :  { %374 = dma.done.wait [#allocation6], 128  }
  0x26   :  { %375 = vsyncadd [#allocation6], 4294967168  ;;  %v382_v0 = vmov 0   ;;  %vm55_vm0 = vcmask 105472   ;;  %v44_v1 = vld [vmem:[#allocation5] sm:$0xff]  ;;  %v38_v2 = vld [vmem:[#allocation2] sm:$0xff] }
  0x27   :  { %300 = vset.pattern.permute.xlu0 %v382_v0  ;;  %301 = vset.pattern.permute.xlu1 %v382_v0  ;;  %v40_v3 = vld [vmem:[#allocation2 + $0x10] sm:$0xff]  ;;  %v39_v4 = vld [vmem:[#allocation2 + $0x8] sm:$0x3f]  ;;  %v41_v5 = vld [vmem:[#allocation2 + $0x18] sm:$0x3f]  ;;  %v383_v6 = vmov 0.0|0.0  }
  0x28   :  { %274 = vmatprep.subr.msk.mxu0 %vm55_vm0, %v44_v1  ;;  %276 = vmatprep.mubr.msk.f32.mxu0 %vm55_vm0, %v38_v2  ;;  %vm384_vm1 = vmmov 0   ;;  %v385_v7 = vmov 0.0   ;;  %v43_v8 = vld [vmem:[#allocation2 + $0x28] sm:$0x1f]  ;;  %vm151_vm2 = vcmask 1045504   ;;  %vm386_vm3 = vmmov 1  }
  0x29   :  { %275 = vmatpush3.xpose.msk.msra.mxu0 %vm55_vm0, %v44_v1  ;;  %47 = vperm.xlu0 %300, %v40_v3   ;;  %vm288_vm4 = vmpackc.low %vm151_vm2, %vm386_vm3  ;;  %v42_v18 = vld [vmem:[#allocation2 + $0x20] sm:$0x1f]  ;;  %vm147_vm5 = vcmask 113664   ;;  %vm225_vm6 = vcmask 61440   ;;  %s387_s1 = smov [#allocation7]  }
  0x2a   :  { %286 = vmatprep.subr.bf16.mxu1 %v383_v6  ;;  %283 = vmatprep.mubr.msk.f32.mxu1 %vm384_vm1, %v385_v7  ;;  %s253_s6 = sshll.u32 %s387_s1, 4  ;;  %s254_s6 = int_to_ptr.vmem [resolvable:$true] %s253_s6 }
  0x2b   :  { %144 = vperm.xlu1 %301, %v43_v8   ;;  %s350_s7 = scalar_lea.vmem %s254_s6, 128  ;;  %p355_p3 = scmp.lt.s32.totalorder %s254_s6, %s254_s6 }
  0x2c   :  { %277 = vmatmul.mubr.msk.f32.vlgmr.msra.gmra.mrb[0].mxu0 %vm55_vm0, %v39_v4  ;;  %p351_p2 = scmp.ne.s32.totalorder %s254_s6, %s350_s7  ;;  %p356_p4 = scmp.lt.s32.totalorder %s350_s7, %s350_s7 }
  0x2d   :  { %52 = vperm.xlu0 %300, %v41_v5  }
  0x2e   :  { %p357_p5 = por %p356_p4, %p355_p3 }
  0x30   :  { %p358_p6 = pnand %p357_p5, %p351_p2 }
  0xa8   :  { %v48_v9 = vpop.permute.xlu0 %47 }
  0xaa   :  { %v145_v19 = vpop.permute.xlu1 %144 }
  0xac   :  { %v53_v10 = vpop.permute.xlu0 %52 }
  0xff   :  { %v278_v11 = vpop.f32.mrb[0].mxu0 }
 0x100   :  { %v137_v12 = vadd.f32 %v278_v11, %v53_v10  ;;  %v131_v13 = vpop.f32.mrb[1].mxu0 }
 0x101   :  { %v132_v14 = vadd.f32 %v131_v13, %v48_v9 }
 0x102   :  { %v141_v15 = vmax.f32 %v137_v12, 0.0 }
 0x103   :  { %v140_v16 = vmax.f32 %v132_v14, 0.0 }
 0x105   :  { %v287_v17 = vpack.c.bf16 %v141_v15, %v140_v16 }
 0x107   :  { %289 = vmatpush3.bf16.msk.msra.mxu1 %vm288_vm4, %v287_v17 }
 0x10a   :  { %284 = vmatmul.mubr.msk.f32.vlgmr.msra.gmra.mrb[0].mxu1 %vm147_vm5, %v42_v18 }
 0x1dd   :  { %v221_v20 = vpop.f32.mrb[0].mxu1 }
 0x1de   :  { %v222_v21 = vadd.f32 %v221_v20, %v145_v19  ;;  %v285_v22 = vpop.f32.mrb[1].mxu1 }
 0x1e0   :  { %v226_v23 = vsel %vm225_vm6, %v222_v21, -inf }
 0x1e1   :  { %v227_v24 = vrot.slane %v226_v23, 4 }
 0x1e3   :  { %v228_v25 = vmax.f32 %v226_v23, %v227_v24 }
 0x1e5   :  { %v229_v26 = vrot.slane %v228_v25, 2 }
 0x1e7   :  { %v230_v27 = vmax.f32 %v228_v25, %v229_v26 }
 0x1e9   :  { %v231_v28 = vrot.slane %v230_v27, 1 }
 0x1eb   :  { %v232_v29 = vmax.f32 %v230_v27, %v231_v28 }
 0x1ed   :  { %v233_v30 = vsub.f32 %v222_v21, %v232_v29 }
 0x1ef   :  { %v234_v31 = vmul.f32 1.442695, %v233_v30 }
 0x1f1   :  { %302 = vpow2.f32 %v234_v31 }
 0x1fb   :  { %v303_v32 = vpop.eup %302 }
 0x1fc   :  { %v236_v33 = vsel %vm225_vm6, %v303_v32, 0.0 }
 0x1fd   :  { %v237_v34 = vrot.slane %v236_v33, 4 }
 0x1ff   :  { %v238_v35 = vadd.f32 %v237_v34, %v236_v33 }
 0x201   :  { %v239_v36 = vrot.slane %v238_v35, 2 }
 0x203   :  { %v240_v37 = vadd.f32 %v239_v36, %v238_v35 }
 0x205   :  { %v241_v38 = vrot.slane %v240_v37, 1 }
 0x207   :  { %v242_v39 = vadd.f32 %v241_v38, %v240_v37 }
 0x209   :  { %304 = vlog2.f32 %v242_v39 }
 0x213   :  { %v305_v40 = vpop.eup %304 }
 0x214   :  { %v244_v41 = vmul.f32 0.6931472, %v305_v40 }
 0x216   :  { %v245_v42 = vsub.f32 %v233_v30, %v244_v41 }
 0x218   :  { %246 = vst.msk [vmem:[#allocation7] sm:$0x1f] %vm225_vm6, %v245_v42 }
 0x219   :  { %361 = shalt.err (!%p358_p6)
}
 0x21a   :  { %s362_s10 = scalar_lea.hbm %s444_s2, 128 }
 0x21b   :  { %p363_p7 = scmp.ne.s32.totalorder %s444_s2, %s362_s10  ;;  %p366_p8 = scmp.lt.u32.totalorder %s362_s10, %s444_s2 }
 0x21d   :  { %p368_p9 = pnand %p366_p8, %p363_p7 }
 0x21f   :  { %371 = shalt.err (!%p368_p9)
}
 0x220   :  { %256 = dma.vmem_to_hbm [thread:$0]  %s254_s6, 128, %s444_s2, [#allocation4]  }
 0x221   :  { %376 = dma.done.wait [#allocation4], 128  }
 0x222   :  { %377 = vsyncadd [#allocation4], 4294967168 }
 0x223   :  { %260 = vsyncpa [#allocation3], 1 }
 0x224   :  { %261 = vsyncpa [#allocation6], 1 }
 0x225   :  { %262 = vsyncpa [#allocation4], 1 }

</bundles_post_ra>
